<compile_context>
chip_gen: v6e
topology: v6e:2x2x1
jax: 0.10.0
libtpu: 0.0.40
codegen_flags: <defaults>
</compile_context>

<pallas_src>
import math

import jax
import jax.numpy as jnp
from jax.experimental import pallas as pl
from jax.experimental.pallas import tpu as pltpu


def _round_up(x, m):
    return ((x + m - 1) // m) * m


def _conv1x1_kernel(x_ref, w_ref, b_ref, o_ref):
    """out[b] = W @ x[b] + bias for every batch row in this block.

    x_ref: (TILE_B, C_in, TILE_P)   -- lane axis = pixels (lane-dense)
    w_ref: (C_out, C_in)            -- resident across the whole grid
    b_ref: (C_out, 1)
    o_ref: (TILE_B, C_out, TILE_P)
    """
    w = w_ref[...]
    bias = b_ref[...]
    tile_b = x_ref.shape[0]
    # TILE_B is small (whole batch folded into one grid step when it fits); a
    # static unrolled loop keeps each (C_out, TILE_P) matmul lane-dense and
    # avoids the result transpose an einsum('oc,bcp->bop') would introduce.
    for i in range(tile_b):
        acc = jnp.dot(w, x_ref[i], preferred_element_type=jnp.float32)
        o_ref[i] = (acc + bias).astype(o_ref.dtype)


def _vmem_capacity_bytes():
    try:
        return int(pltpu.get_tpu_info().vmem_capacity_bytes)
    except Exception:
        # Conservative fallback: v7x has 64 MiB per TensorCore.
        return 64 << 20


def _conv1x1_channel_major(x, w, b, *, tile_p_cap=65536):
    """x: (B, C_in, P), w: (C_out, C_in), b: (C_out, 1) -> (B, C_out, P)."""
    bsz, c_in, p = x.shape
    c_out = w.shape[0]
    itemsize = jnp.dtype(x.dtype).itemsize

    # ---- Generation-aware VMEM budgeting --------------------------------
    vmem_cap = _vmem_capacity_bytes()
    budget = vmem_cap // 4  # headroom per-TC (v7x: 64 MiB/TC -> 16 MiB budget)

    # Resident (constant index_map) weight / bias blocks are double-buffered by
    # default; account for their (8,128)-padded footprints.  pl.Buffered(1) on
    # those specs would halve this; kept at the default for portability.
    w_resident = 2 * _round_up(c_out, 8) * _round_up(c_in, 128) * itemsize
    b_resident = 2 * _round_up(c_out, 8) * 128 * itemsize
    tile_budget = max(budget - w_resident - b_resident, 1 << 20)

    # Fold the (usually small) batch into each grid step; shrink TILE_B only if
    # even a 128-wide pixel tile would not fit the budget.
    bytes_per_col = 2 * (c_in + c_out) * itemsize  # x + out, double-buffered
    tile_b = int(max(1, min(bsz, tile_budget // (bytes_per_col * 128))))

    # Largest 128-multiple pixel tile that fits the budget, capped (16K-64K is
    # the sweet spot for HBM-bound streaming) and never larger than rounded P.
    max_tile = (tile_budget // (bytes_per_col * tile_b)) // 128 * 128
    tile_p = int(max(128, min(tile_p_cap, max_tile, _round_up(p, 128))))

    # Ceil-div grids with partial boundary blocks: no wrapper-side pad/slice.
    grid = (pl.cdiv(p, tile_p), pl.cdiv(bsz, tile_b))

    used = (w_resident + b_resident
            + 2 * tile_b * (c_in + c_out) * tile_p * itemsize)
    vmem_limit = int(min(vmem_cap, max(used + (4 << 20), 32 << 20)))

    return pl.pallas_call(
        _conv1x1_kernel,
        out_shape=jax.ShapeDtypeStruct((bsz, c_out, p), x.dtype),
        grid=grid,
        in_specs=[
            pl.BlockSpec((tile_b, c_in, tile_p), lambda pi, bi: (bi, 0, pi)),
            # Weight / bias resident across the grid (constant index map).
            pl.BlockSpec((c_out, c_in), lambda pi, bi: (0, 0)),
            pl.BlockSpec((c_out, 1), lambda pi, bi: (0, 0)),
        ],
        out_specs=pl.BlockSpec(
            (tile_b, c_out, tile_p), lambda pi, bi: (bi, 0, pi)
        ),
        compiler_params=pltpu.CompilerParams(
            # Pixel-tile axis leads the grid so megacore (v7x) splits the long
            # pixel axis, not the tiny batch axis, across the two TensorCores.
            dimension_semantics=("parallel", "parallel"),
            vmem_limit_bytes=vmem_limit,
        ),
    )(x, w, b)


class SpatialConvOrderK:
    """JAX/Pallas port of PyTorch SpatialConvOrderK (include_self=True).

    With include_self=True, torch.cat([x], dim=1) is a no-op, so the forward
    pass is exactly the 1x1 conv `self.mlp`.
    """

    def __init__(self, c_in, c_out, order=2, include_self=True, key=None,
                 tile_p_cap=65536):
        assert include_self, \
            "include_self=False makes torch.cat([]) fail in the reference"
        self.include_self = include_self
        self.order = order
        self.c_in = c_in
        self.c_out = c_out
        self.tile_p_cap = tile_p_cap
        if key is None:
            key = jax.random.PRNGKey(0)
        kw, kb = jax.random.split(key)
        # Deterministic init mimicking nn.Conv2d defaults (kernel_size=1).
        fan_in = c_in
        bound_w = math.sqrt(1.0 / fan_in)
        bound_b = 1.0 / math.sqrt(fan_in)
        # Stored channel-major like PyTorch: (c_out, c_in); bias as (c_out, 1).
        self.weight = jax.random.uniform(
            kw, (c_out, c_in), jnp.float32, -bound_w, bound_w
        )
        self.bias = jax.random.uniform(
            kb, (c_out, 1), jnp.float32, -bound_b, bound_b
        )

    def __call__(self, x):
        # x: (B, C_in, H, W) NCHW, or (B, C_in, H) which is unsqueezed to W=1.
        if x.ndim < 4:
            squeeze = True
            x = x[..., None]
        else:
            squeeze = False
        b, c_in, h, w = x.shape
        assert c_in == self.c_in

        # NCHW -> (B, C_in, H*W): a free reshape (no transpose, no HBM copy).
        x_cm = x.reshape(b, c_in, h * w)

        out_cm = _conv1x1_channel_major(
            x_cm, self.weight, self.bias, tile_p_cap=self.tile_p_cap
        )

        # (B, C_out, H*W) -> NCHW: free reshape again.
        out = out_cm.reshape(b, self.c_out, h, w)
        if squeeze:
            out = out[..., 0]
        return out


if __name__ == "__main__":
    key = jax.random.PRNGKey(0)
    kx, kx3, kxt, kp = jax.random.split(key, 4)

    B, C_IN, C_OUT, H, W = 2, 4, 8, 16, 16
    x = jax.random.normal(kx, (B, C_IN, H, W), jnp.float32)

    mod = SpatialConvOrderK(C_IN, C_OUT, order=2, include_self=True, key=kp)

    # 4-D NCHW path.
    out = jax.block_until_ready(mod(x))
    ref = (
        jnp.einsum("bchw,oc->bohw", x, mod.weight)
        + mod.bias.reshape(1, C_OUT, 1, 1)
    )
    assert out.shape == (B, C_OUT, H, W), out.shape
    assert jnp.allclose(out, ref, atol=1e-5, rtol=1e-5), \
        "mismatch vs reference (4-D)"

    # 3-D path with a pixel count that is NOT a multiple of 128: exercises a
    # single partial boundary block (no wrapper-side pad/slice).
    H3 = 13
    x3 = jax.random.normal(kx3, (B, C_IN, H3), jnp.float32)
    out3 = jax.block_until_ready(mod(x3))
    ref3 = (
        jnp.einsum("bch,oc->boh", x3, mod.weight)
        + mod.bias.reshape(1, C_OUT, 1)
    )
    assert out3.shape == (B, C_OUT, H3), out3.shape
    assert jnp.allclose(out3, ref3, atol=1e-5, rtol=1e-5), \
        "mismatch vs reference (3-D)"

    # Multi-step grid with a partial tail block (force tile cap to 128):
    # 5*52 = 260 pixels = 2 full 128-tiles + a 4-column tail.
    mod_small = SpatialConvOrderK(C_IN, C_OUT, key=kp, tile_p_cap=128)
    Ht, Wt = 5, 52
    xt = jax.random.normal(kxt, (B, C_IN, Ht, Wt), jnp.float32)
    outt = jax.block_until_ready(mod_small(xt))
    reft = (
        jnp.einsum("bchw,oc->bohw", xt, mod_small.weight)
        + mod_small.bias.reshape(1, C_OUT, 1, 1)
    )
    assert outt.shape == (B, C_OUT, Ht, Wt), outt.shape
    assert jnp.allclose(outt, reft, atol=1e-5, rtol=1e-5), \
        "mismatch vs reference (partial tail)"

    print("KERNEL_OK")
</pallas_src>

<mosaic_0001>
module attributes {stable_mosaic.version = 11 : i64} {
  func.func @_conv1x1_kernel(%arg0: i32, %arg1: i32, %arg2: memref<2x4x256xf32, #tpu.memory_space<vmem>>, %arg3: memref<8x4xf32, #tpu.memory_space<vmem>>, %arg4: memref<8x1xf32, #tpu.memory_space<vmem>>, %arg5: memref<2x8x256xf32, #tpu.memory_space<vmem>>) attributes {dimension_semantics = [#tpu.dimension_semantics<parallel>, #tpu.dimension_semantics<parallel>], iteration_bounds = array<i64: 1, 1>, scalar_prefetch = 0 : i64, scratch_operands = 0 : i64, tpu.core_type = #tpu.core_type<tc>, window_params = [{transform_indices = @transform_0, window_bounds = array<i64: 2, 4, 256>}, {pipeline_mode = #tpu.pipeline_mode<synchronous>, transform_indices = @transform_1, window_bounds = array<i64: 8, 4>}, {pipeline_mode = #tpu.pipeline_mode<synchronous>, transform_indices = @transform_2, window_bounds = array<i64: 8, 1>}, {transform_indices = @transform_3, window_bounds = array<i64: 2, 8, 256>}]} {
    %c0 = arith.constant 0 : index
    %c0_0 = arith.constant 0 : index
    %0 = vector.load %arg3[%c0, %c0_0] : memref<8x4xf32, #tpu.memory_space<vmem>>, vector<8x4xf32>
    %c0_1 = arith.constant 0 : index
    %c0_2 = arith.constant 0 : index
    %1 = vector.load %arg4[%c0_1, %c0_2] : memref<8x1xf32, #tpu.memory_space<vmem>>, vector<8x1xf32>
    %c0_3 = arith.constant 0 : index
    %c0_4 = arith.constant 0 : index
    %c0_5 = arith.constant 0 : index
    %2 = vector.load %arg2[%c0_3, %c0_4, %c0_5] : memref<2x4x256xf32, #tpu.memory_space<vmem>>, vector<1x4x256xf32>
    %3 = vector.shape_cast %2 : vector<1x4x256xf32> to vector<4x256xf32>
    %cst = arith.constant dense<0.000000e+00> : vector<8x256xf32>
    %4 = tpu.matmul %0, %3, %cst {dimension_numbers = #tpu.dot_dimension_numbers<[1], [0], [0], [1], [0, 0, 1, 1], [], []>} : vector<8x4xf32>, vector<4x256xf32>, vector<8x256xf32> -> vector<8x256xf32>
    %5 = vector.broadcast %1 : vector<8x1xf32> to vector<8x256xf32>
    %6 = arith.addf %4, %5 : vector<8x256xf32>
    %c0_6 = arith.constant 0 : index
    %c0_7 = arith.constant 0 : index
    %c0_8 = arith.constant 0 : index
    %7 = vector.load %arg5[%c0_6, %c0_7, %c0_8] : memref<2x8x256xf32, #tpu.memory_space<vmem>>, vector<1x8x256xf32>
    %8 = vector.shape_cast %7 : vector<1x8x256xf32> to vector<8x256xf32>
    %9 = vector.shape_cast %6 : vector<8x256xf32> to vector<1x8x256xf32>
    tpu.vector_store %arg5[%c0_6, %c0_7, %c0_8], %9 {strides = array<i32>} : memref<2x8x256xf32, #tpu.memory_space<vmem>>, vector<1x8x256xf32>,
    %c1 = arith.constant 1 : index
    %c0_9 = arith.constant 0 : index
    %c0_10 = arith.constant 0 : index
    %10 = vector.load %arg2[%c1, %c0_9, %c0_10] : memref<2x4x256xf32, #tpu.memory_space<vmem>>, vector<1x4x256xf32>
    %11 = vector.shape_cast %10 : vector<1x4x256xf32> to vector<4x256xf32>
    %cst_11 = arith.constant dense<0.000000e+00> : vector<8x256xf32>
    %12 = tpu.matmul %0, %11, %cst_11 {dimension_numbers = #tpu.dot_dimension_numbers<[1], [0], [0], [1], [0, 0, 1, 1], [], []>} : vector<8x4xf32>, vector<4x256xf32>, vector<8x256xf32> -> vector<8x256xf32>
    %13 = vector.broadcast %1 : vector<8x1xf32> to vector<8x256xf32>
    %14 = arith.addf %12, %13 : vector<8x256xf32>
    %c1_12 = arith.constant 1 : index
    %c0_13 = arith.constant 0 : index
    %c0_14 = arith.constant 0 : index
    %15 = vector.load %arg5[%c1_12, %c0_13, %c0_14] : memref<2x8x256xf32, #tpu.memory_space<vmem>>, vector<1x8x256xf32>
    %16 = vector.shape_cast %15 : vector<1x8x256xf32> to vector<8x256xf32>
    %17 = vector.shape_cast %14 : vector<8x256xf32> to vector<1x8x256xf32>
    tpu.vector_store %arg5[%c1_12, %c0_13, %c0_14], %17 {strides = array<i32>} : memref<2x8x256xf32, #tpu.memory_space<vmem>>, vector<1x8x256xf32>,
    return
  }
  func.func @transform_0(%arg0: i32, %arg1: i32) -> (i32, i32, i32) {
    %c0_i32 = arith.constant 0 : i32
    %c0_i32_0 = arith.constant 0 : i32
    return %arg1, %c0_i32, %arg0 : i32, i32, i32
  }
  func.func @transform_1(%arg0: i32, %arg1: i32) -> (i32, i32) {
    %c0_i32 = arith.constant 0 : i32
    %c0_i32_0 = arith.constant 0 : i32
    %c0_i32_1 = arith.constant 0 : i32
    return %c0_i32, %c0_i32_0 : i32, i32
  }
  func.func @transform_2(%arg0: i32, %arg1: i32) -> (i32, i32) {
    %c0_i32 = arith.constant 0 : i32
    %c0_i32_0 = arith.constant 0 : i32
    %c0_i32_1 = arith.constant 0 : i32
    return %c0_i32, %c0_i32_0 : i32, i32
  }
  func.func @transform_3(%arg0: i32, %arg1: i32) -> (i32, i32, i32) {
    %c0_i32 = arith.constant 0 : i32
    %c0_i32_0 = arith.constant 0 : i32
    return %arg1, %c0_i32, %arg0 : i32, i32, i32
  }
}

</mosaic_0001>

<bundles_post_ra>
// kernel: tpu_custom_call.1
= control target key start
LH: loop header
LB: loop body
LE: loop exit
PB: predicated region body
PF: predicated region fallthrough
CT: control target
= control target key end

     0   :  { %vm29_vm0 = vcmask 1043456   ;;  %v242_v4 = vmov 0.0   ;;  %s286_s0 = inlined_call_operand.vmem [shape: f32[2,4,256], index: 0, kind: input, shape index: {}]   ;;  %s287_s1 = inlined_call_operand.vmem [shape: f32[8,4], index: 1, kind: input, shape index: {}]   ;;  %s288_s2 = inlined_call_operand.vmem [shape: f32[8,1], index: 2, kind: input, shape index: {}]   ;;  %s289_s3 = inlined_call_operand.hbm [shape: f32[2,8,256], index: 3, kind: output, shape index: {}]  }
   0x1   :  { %v17_v0 = vld [vmem:[%s286_s0] sm:$0xff]  ;;  %v208_v1 = vld [vmem:[%s286_s0 + $0x8] sm:$0xff]  ;;  %98 = vmatprep.mubr.f32.mxu0 %v242_v4  ;;  %179 = vmatprep.mubr.f32.mxu1 %v242_v4 }
   0x2   :  { %v24_v2 = vcombine.high %v17_v0, %v17_v0  ;;  %v110_v3 = vcombine.high %v208_v1, %v208_v1 }
   0x3   :  { %8 = vsyncpa [#allocation3], 0  ;;  %v15_v5 = vld [vmem:[%s287_s1] sm:$0xff]  ;;  %vm25_vm1 = vcmask 31744   ;;  %v243_v6 = vmov 0   ;;  %s244_s0 = smov [#allocation2]  }
   0x4   :  { %217 = vset.pattern.permute.xlu0 %v243_v6  ;;  %205 = vmatprep.subr.msk.mxu0 %vm29_vm0, %v24_v2  ;;  %v16_v7 = vld [vmem:[%s288_s2] sm:$0xff]  ;;  %s194_s1 = sshll.u32 %s244_s0, 4  ;;  %s195_s1 = int_to_ptr.vmem [resolvable:$true] %s194_s1 }
   0x5   :  { %209 = vmatprep.subr.msk.mxu1 %vm29_vm0, %v110_v3  ;;  %206 = vmatpush1.msk.msra.mxu0 %vm29_vm0, %v17_v0  ;;  %s220_s2 = scalar_lea.vmem %s195_s1, 512  ;;  %p225_p1 = scmp.lt.s32.totalorder %s195_s1, %s195_s1 }
   0x6   :  { %210 = vmatpush1.msk.msra.mxu1 %vm29_vm0, %v208_v1  ;;  %207 = vmatmul.mubr.msk.f32.vlgmr.msra.gmra.mxu0 %vm25_vm1, %v15_v5  ;;  %p221_p0 = scmp.ne.s32.totalorder %s195_s1, %s220_s2  ;;  %p226_p2 = scmp.lt.s32.totalorder %s220_s2, %s220_s2 }
   0x7   :  { %211 = vmatmul.mubr.msk.f32.vlgmr.msra.gmra.mxu1 %vm25_vm1, %v15_v5  ;;  %20 = vperm.xlu0 %217, %v16_v7  }
   0x8   :  { %p227_p3 = por %p226_p2, %p225_p1 }
   0xa   :  { %p228_p4 = pnand %p227_p3, %p221_p0 }
  0x82   :  { %v21_v8 = vpop.permute.xlu0 %20 }
  0xc6   :  { %v100_v9 = vpop.f32.mrf.mxu0 }
  0xc7   :  { %v181_v10 = vpop.f32.mrf.mxu1  ;;  %v101_v11 = vadd.f32 %v100_v9, %v21_v8 }
  0xc8   :  { %v182_v12 = vadd.f32 %v181_v10, %v21_v8  ;;  %v102_v13 = vpop.f32.mrf.mxu0 }
  0xc9   :  { %v183_v14 = vpop.f32.mrf.mxu1  ;;  %105 = vst [vmem:[#allocation2] sm:$0xff] %v101_v11  ;;  %v103_v15 = vadd.f32 %v102_v13, %v21_v8 }
  0xca   :  { %187 = vst [vmem:[#allocation2 + $0x10] sm:$0xff] %v182_v12  ;;  %v184_v16 = vadd.f32 %v183_v14, %v21_v8 }
  0xcb   :  { %106 = vst [vmem:[#allocation2 + $0x8] sm:$0xff] %v103_v15 }
  0xcc   :  { %188 = vst [vmem:[#allocation2 + $0x18] sm:$0xff] %v184_v16 }
  0xcd   :  { %231 = shalt.err (!%p228_p4)
}
  0xce   :  { %s245_s20 = smov 256   ;;  %s246_s21 = smov 16  }
  0xcf   :  { %200 = dma.vmem_to_hbm [thread:$0]  %s195_s1, 512, %s289_s3, [#allocation3], %s245_s20, %s245_s20, %s246_s21  }
  0xd0   :  { %240 = dma.done.wait [#allocation3], 512  }
  0xd1   :  { %241 = vsyncadd [#allocation3], 4294966784 }
  0xd2   :  { %204 = vsyncpa [#allocation3], 1 }

</bundles_post_ra>
